<compile_context>
chip_gen: v6e
topology: v6e:2x2x1
jax: 0.10.0
libtpu: 0.0.40
codegen_flags: <defaults>
</compile_context>

<pallas_src>
import math

import jax
import jax.numpy as jnp
from jax import lax
from jax.experimental import pallas as pl
from jax.experimental.pallas import tpu as pltpu

VMEM_SPEC = pl.BlockSpec(memory_space=pltpu.MemorySpace.VMEM)
LN_EPS = 1e-12


# ------------------------------- tiling utils ------------------------------ #

def _round_up(x, m):
    return (x + m - 1) // m * m


def _pick_tile(dim, prefs):
    for t in prefs:
        if dim % t == 0:
            return t
    return dim


def _row_tiles(m):
    """Row (sublane) tiling: pad to a multiple of 16, tile up to 256 rows."""
    mp = _round_up(m, 16)
    tm = _pick_tile(mp, (256, 128, 64, 32, 16))
    return mp, tm


def _feat_tile(n):
    """Lane-dim tiling: multiple of 128 if possible, else the full (small) dim."""
    return _pick_tile(n, (512, 256, 128))


# ------------------------------ in-kernel math ------------------------------ #

def _gelu(y):
    # TODO(synk): HF BERT uses the exact erf-based GELU; tanh formulation used
    # here for guaranteed Mosaic lowering (numerically ~1e-3 close).
    c = 0.7978845608028654  # sqrt(2/pi)
    return 0.5 * y * (1.0 + jnp.tanh(c * (y + 0.044715 * y * y * y)))


def _layernorm(y, g, b, eps=LN_EPS):
    mu = jnp.mean(y, axis=-1, keepdims=True)
    var = jnp.mean((y - mu) * (y - mu), axis=-1, keepdims=True)
    return (y - mu) * lax.rsqrt(var + eps) * g + b


# ----------------------------- Pallas kernels ------------------------------ #

def _embed_ln_kernel(we_ref, pe_ref, te_ref, g_ref, b_ref, o32_ref, o16_ref):
    y = we_ref[...] + pe_ref[...] + te_ref[...]
    out = _layernorm(y, g_ref[...], b_ref[...])
    o32_ref[...] = out
    o16_ref[...] = out.astype(jnp.bfloat16)


def embed_layernorm(we, pe, te, gamma, beta, tm):
    mp, h = we.shape
    row = pl.BlockSpec((tm, h), lambda i: (i, 0))
    vec = pl.BlockSpec((1, h), lambda i: (0, 0))
    return pl.pallas_call(
        _embed_ln_kernel,
        out_shape=(jax.ShapeDtypeStruct((mp, h), jnp.float32),
                   jax.ShapeDtypeStruct((mp, h), jnp.bfloat16)),
        grid=(mp // tm,),
        in_specs=[row, row, row, vec, vec],
        out_specs=(row, row),
        compiler_params=pltpu.CompilerParams(dimension_semantics=("parallel",)),
    )(we, pe, te, gamma, beta)


def _qkv_head_kernel(x_ref, w_ref, b_ref, o_ref):
    y = jnp.dot(x_ref[...], w_ref[0], preferred_element_type=jnp.float32)
    o_ref[0] = y + b_ref[0]


def qkv_projection(x16, w_heads, b_heads, tm):
    """x16: [Mp, H] bf16; w_heads: [3*nH, H, dh] bf16 -> qkv [3*nH, Mp, dh] f32."""
    mp, h = x16.shape
    n3, _, dh = w_heads.shape
    return pl.pallas_call(
        _qkv_head_kernel,
        out_shape=jax.ShapeDtypeStruct((n3, mp, dh), jnp.float32),
        grid=(mp // tm, n3),
        in_specs=[
            pl.BlockSpec((tm, h), lambda i, j: (i, 0)),
            pl.BlockSpec((1, h, dh), lambda i, j: (j, 0, 0)),
            pl.BlockSpec((1, 1, dh), lambda i, j: (j, 0, 0)),
        ],
        out_specs=pl.BlockSpec((1, tm, dh), lambda i, j: (j, i, 0)),
        compiler_params=pltpu.CompilerParams(
            dimension_semantics=("parallel", "parallel")),
    )(x16, w_heads, b_heads)


def _attention_kernel(q_ref, k_ref, v_ref, m_ref, o_ref):
    q = q_ref[0].astype(jnp.bfloat16)          # (S, dh); scale folded into Wq
    k = k_ref[0].astype(jnp.bfloat16)
    v = v_ref[0].astype(jnp.bfloat16)
    s = jnp.dot(q, k.T, preferred_element_type=jnp.float32)      # (S, S)
    s = s + m_ref[0]                                             # (1, S) key mask
    mx = jnp.max(s, axis=-1, keepdims=True)
    p = jnp.exp(s - mx)
    l = jnp.sum(p, axis=-1, keepdims=True)
    ctx = jnp.dot(p.astype(jnp.bfloat16), v,
                  preferred_element_type=jnp.float32)            # (S, dh)
    o_ref[0] = ctx * pl.reciprocal(l, approx=True)


def multi_head_attention(qkv, mask_b1s, batch, seq, n_heads, dh):
    """qkv: [3*nH, Mp, dh]; mask: [B, 1, S] -> ctx [nH, Mp, dh] f32."""
    mp = qkv.shape[1]
    q_spec = pl.BlockSpec((1, seq, dh), lambda b, h: (h, b, 0))
    k_spec = pl.BlockSpec((1, seq, dh), lambda b, h: (n_heads + h, b, 0))
    v_spec = pl.BlockSpec((1, seq, dh), lambda b, h: (2 * n_heads + h, b, 0))
    m_spec = pl.BlockSpec((1, 1, seq), lambda b, h: (b, 0, 0))
    return pl.pallas_call(
        _attention_kernel,
        out_shape=jax.ShapeDtypeStruct((n_heads, mp, dh), jnp.float32),
        grid=(batch, n_heads),
        in_specs=[q_spec, k_spec, v_spec, m_spec],
        out_specs=pl.BlockSpec((1, seq, dh), lambda b, h: (h, b, 0)),
        compiler_params=pltpu.CompilerParams(
            dimension_semantics=("parallel", "parallel")),
    )(qkv, qkv, qkv, mask_b1s)


def _attn_out_ln_kernel(ctx_ref, wo_ref, bo_ref, res_ref, g_ref, b_ref,
                        o32_ref, o16_ref, acc_ref):
    h = pl.program_id(1)

    @pl.when(h == 0)
    def _():
        acc_ref[...] = jnp.zeros_like(acc_ref)

    acc_ref[...] += jnp.dot(ctx_ref[0].astype(jnp.bfloat16), wo_ref[0],
                            preferred_element_type=jnp.float32)

    @pl.when(h == pl.num_programs(1) - 1)
    def _():
        y = acc_ref[...] + bo_ref[...] + res_ref[...]
        out = _layernorm(y, g_ref[...], b_ref[...])
        o32_ref[...] = out
        o16_ref[...] = out.astype(jnp.bfloat16)


def attn_out_residual_ln(ctx, wo_heads, bo, res, gamma, beta, tm):
    """Fused: sum_h ctx_h @ Wo_h + bias + residual + LayerNorm."""
    n_heads, mp, dh = ctx.shape
    h = wo_heads.shape[-1]
    row = pl.BlockSpec((tm, h), lambda i, j: (i, 0))
    vec = pl.BlockSpec((1, h), lambda i, j: (0, 0))
    return pl.pallas_call(
        _attn_out_ln_kernel,
        out_shape=(jax.ShapeDtypeStruct((mp, h), jnp.float32),
                   jax.ShapeDtypeStruct((mp, h), jnp.bfloat16)),
        grid=(mp // tm, n_heads),
        in_specs=[
            pl.BlockSpec((1, tm, dh), lambda i, j: (j, i, 0)),
            pl.BlockSpec((1, dh, h), lambda i, j: (j, 0, 0)),
            vec, row, vec, vec,
        ],
        out_specs=(row, row),
        scratch_shapes=[pltpu.VMEM((tm, h), jnp.float32)],
        compiler_params=pltpu.CompilerParams(
            dimension_semantics=("parallel", "arbitrary")),
    )(ctx, wo_heads, bo, res, gamma, beta)


def _ffn_up_kernel(x_ref, w_ref, b_ref, o_ref):
    y = jnp.dot(x_ref[...], w_ref[...], preferred_element_type=jnp.float32)
    o_ref[...] = _gelu(y + b_ref[...]).astype(o_ref.dtype)


def ffn_up_gelu(x16, w1, b1, tm):
    mp, h = x16.shape
    inter = w1.shape[1]
    tn = _feat_tile(inter)
    return pl.pallas_call(
        _ffn_up_kernel,
        out_shape=jax.ShapeDtypeStruct((mp, inter), jnp.bfloat16),
        grid=(mp // tm, inter // tn),
        in_specs=[
            pl.BlockSpec((tm, h), lambda i, j: (i, 0)),
            pl.BlockSpec((h, tn), lambda i, j: (0, j)),
            pl.BlockSpec((1, tn), lambda i, j: (0, j)),
        ],
        out_specs=pl.BlockSpec((tm, tn), lambda i, j: (i, j)),
        compiler_params=pltpu.CompilerParams(
            dimension_semantics=("parallel", "parallel")),
    )(x16, w1, b1)


def _ffn_down_ln_kernel(xg_ref, w_ref, b_ref, res_ref, g_ref, beta_ref,
                        o32_ref, o16_ref, acc_ref):
    k = pl.program_id(1)

    @pl.when(k == 0)
    def _():
        acc_ref[...] = jnp.zeros_like(acc_ref)

    acc_ref[...] += jnp.dot(xg_ref[...], w_ref[...],
                            preferred_element_type=jnp.float32)

    @pl.when(k == pl.num_programs(1) - 1)
    def _():
        y = acc_ref[...] + b_ref[...] + res_ref[...]
        out = _layernorm(y, g_ref[...], beta_ref[...])
        o32_ref[...] = out
        o16_ref[...] = out.astype(jnp.bfloat16)


def ffn_down_residual_ln(x_gelu16, w2, b2, res, gamma, beta, tm):
    """Fused: down-projection (K-tiled) + bias + residual + LayerNorm."""
    mp, inter = x_gelu16.shape
    h = w2.shape[1]
    tk = _feat_tile(inter)
    row = pl.BlockSpec((tm, h), lambda i, k: (i, 0))
    vec = pl.BlockSpec((1, h), lambda i, k: (0, 0))
    return pl.pallas_call(
        _ffn_down_ln_kernel,
        out_shape=(jax.ShapeDtypeStruct((mp, h), jnp.float32),
                   jax.ShapeDtypeStruct((mp, h), jnp.bfloat16)),
        grid=(mp // tm, inter // tk),
        in_specs=[
            pl.BlockSpec((tm, tk), lambda i, k: (i, k)),
            pl.BlockSpec((tk, h), lambda i, k: (k, 0)),
            vec, row, vec, vec,
        ],
        out_specs=(row, row),
        scratch_shapes=[pltpu.VMEM((tm, h), jnp.float32)],
        compiler_params=pltpu.CompilerParams(
            dimension_semantics=("parallel", "arbitrary")),
    )(x_gelu16, w2, b2, res, gamma, beta)


def _pooler_cls_kernel(cls_ref, wp_ref, bp_ref, wc_ref, bc_ref, o_ref):
    pooled = jnp.tanh(jnp.dot(cls_ref[...], wp_ref[...],
                              preferred_element_type=jnp.float32) + bp_ref[...])
    o_ref[...] = jnp.dot(pooled, wc_ref[...],
                         preferred_element_type=jnp.float32) + bc_ref[...]


def pooler_classifier(cls_tok, wp, bp, wc, bc, num_labels):
    """Fused pooler (dense+tanh on [CLS]) + classifier, 8-row / 128-lane padded."""
    b, _ = cls_tok.shape
    bp_rows = _round_up(b, 8)
    lp = _round_up(num_labels, 128)
    cls_p = jnp.pad(cls_tok, ((0, bp_rows - b), (0, 0)))
    wc_p = jnp.pad(wc, ((0, 0), (0, lp - num_labels)))
    bc_p = jnp.pad(bc, ((0, 0), (0, lp - num_labels)))
    logits = pl.pallas_call(
        _pooler_cls_kernel,
        out_shape=jax.ShapeDtypeStruct((bp_rows, lp), jnp.float32),
        in_specs=[VMEM_SPEC] * 5,
        out_specs=VMEM_SPEC,
    )(cls_p, wp, bp, wc_p, bc_p)
    return logits[:b, :num_labels]


# ------------------------------ Model wrapper ------------------------------ #

def init_params(key, cfg):
    n_keys = 16 + 12 * cfg["num_layers"]
    keys = iter(jax.random.split(key, n_keys))

    def nrm(shape):
        return 0.02 * jax.random.normal(next(keys), shape, dtype=jnp.float32)

    def zeros(shape):
        return jnp.zeros(shape, jnp.float32)

    def ones(shape):
        return jnp.ones(shape, jnp.float32)

    H, inter = cfg["hidden"], cfg["intermediate"]
    params = {
        "word_emb": nrm((cfg["vocab"], H)),
        "pos_emb": nrm((cfg["max_pos"], H)),
        "type_emb": nrm((cfg["type_vocab"], H)),
        "emb_ln_g": ones((1, H)),
        "emb_ln_b": zeros((1, H)),
        "layers": [],
        "pooler_w": nrm((H, H)),
        "pooler_b": zeros((1, H)),
        "cls_w": nrm((H, cfg["num_labels"])),
        "cls_b": zeros((1, cfg["num_labels"])),
    }
    for _ in range(cfg["num_layers"]):
        params["layers"].append({
            "wq": nrm((H, H)), "bq": zeros((1, H)),
            "wk": nrm((H, H)), "bk": zeros((1, H)),
            "wv": nrm((H, H)), "bv": zeros((1, H)),
            "wo": nrm((H, H)), "bo": zeros((1, H)),
            "ln1_g": ones((1, H)), "ln1_b": zeros((1, H)),
            "w1": nrm((H, inter)), "b1": zeros((1, inter)),
            "w2": nrm((inter, H)), "b2": zeros((1, H)),
            "ln2_g": ones((1, H)), "ln2_b": zeros((1, H)),
        })
    return params


def bert_classifier_forward(params, cfg, input_ids, attention_mask, token_type_ids):
    B, S = input_ids.shape
    H, nH = cfg["hidden"], cfg["num_heads"]
    dh = H // nH
    scale = 1.0 / math.sqrt(dh)

    M = B * S
    Mp, tm = _row_tiles(M)
    pad_rows = Mp - M

    # --- embeddings (table gathers are plain-JAX glue; sum+LN is a kernel) ---
    we = params["word_emb"][input_ids].reshape(M, H)
    pe = jnp.broadcast_to(params["pos_emb"][:S][None, :, :], (B, S, H)).reshape(M, H)
    te = params["type_emb"][token_type_ids].reshape(M, H)
    if pad_rows:
        pad = ((0, pad_rows), (0, 0))
        we, pe, te = jnp.pad(we, pad), jnp.pad(pe, pad), jnp.pad(te, pad)
    x32, x16 = embed_layernorm(we, pe, te,
                               params["emb_ln_g"], params["emb_ln_b"], tm)

    # additive key-padding mask, [B, 1, S] (read per (batch, head) via BlockSpec)
    mask_b1s = ((1.0 - attention_mask.astype(jnp.float32)) * -10000.0
                ).reshape(B, 1, S)

    # --- transformer encoder layers (post-LN, HF BertModel semantics) ---
    for layer in params["layers"]:
        # fused Q|K|V in head-major layout; softmax scale folded into Q weights.
        wqkv = jnp.concatenate([layer["wq"] * scale, layer["wk"], layer["wv"]],
                               axis=1)
        bqkv = jnp.concatenate([layer["bq"] * scale, layer["bk"], layer["bv"]],
                               axis=1)
        wqkv_h = wqkv.reshape(H, 3 * nH, dh).transpose(1, 0, 2).astype(jnp.bfloat16)
        bqkv_h = bqkv.reshape(1, 3 * nH, dh).transpose(1, 0, 2)
        wo_h = layer["wo"].reshape(nH, dh, H).astype(jnp.bfloat16)

        qkv = qkv_projection(x16, wqkv_h, bqkv_h, tm)             # [3*nH, Mp, dh]
        ctx = multi_head_attention(qkv, mask_b1s, B, S, nH, dh)   # [nH, Mp, dh]
        x32, x16 = attn_out_residual_ln(ctx, wo_h, layer["bo"], x32,
                                        layer["ln1_g"], layer["ln1_b"], tm)

        gelu16 = ffn_up_gelu(x16, layer["w1"].astype(jnp.bfloat16),
                             layer["b1"], tm)
        x32, x16 = ffn_down_residual_ln(gelu16, layer["w2"].astype(jnp.bfloat16),
                                        layer["b2"], x32,
                                        layer["ln2_g"], layer["ln2_b"], tm)

    # --- pooler (dense + tanh on [CLS]) + classifier head (fused kernel) ---
    cls_tok = x32[:M].reshape(B, S, H)[:, 0, :]                   # [B, H]
    return pooler_classifier(cls_tok, params["pooler_w"], params["pooler_b"],
                             params["cls_w"], params["cls_b"], cfg["num_labels"])


# ----------------------------------- main ----------------------------------- #

if __name__ == "__main__":
    cfg = dict(vocab=64, max_pos=16, type_vocab=2, hidden=32, num_heads=4,
               intermediate=64, num_layers=3, num_labels=3)
    B, S = 2, 8

    root = jax.random.PRNGKey(0)
    k_param, k_ids = jax.random.split(root)

    params = init_params(k_param, cfg)

    input_ids = jax.random.randint(k_ids, (B, S), 0, cfg["vocab"], dtype=jnp.int32)
    attention_mask = jnp.array([[1, 1, 1, 1, 1, 1, 1, 1],
                                [1, 1, 1, 1, 1, 1, 0, 0]], dtype=jnp.int32)
    token_type_ids = jnp.array([[0, 0, 0, 0, 1, 1, 1, 1],
                                [0, 0, 0, 0, 0, 0, 0, 0]], dtype=jnp.int32)

    logits = bert_classifier_forward(params, cfg, input_ids, attention_mask,
                                     token_type_ids)
    logits = jax.block_until_ready(logits)
    assert logits.shape == (B, cfg["num_labels"])
    assert bool(jnp.all(jnp.isfinite(logits)))
    print("KERNEL_OK")
</pallas_src>

<mosaic_0001>
module attributes {stable_mosaic.version = 11 : i64} {
  func.func @_embed_ln_kernel(%arg0: i32, %arg1: memref<16x32xf32, #tpu.memory_space<vmem>>, %arg2: memref<16x32xf32, #tpu.memory_space<vmem>>, %arg3: memref<16x32xf32, #tpu.memory_space<vmem>>, %arg4: memref<1x32xf32, #tpu.memory_space<vmem>>, %arg5: memref<1x32xf32, #tpu.memory_space<vmem>>, %arg6: memref<16x32xf32, #tpu.memory_space<vmem>>, %arg7: memref<16x32xbf16, #tpu.memory_space<vmem>>) attributes {dimension_semantics = [#tpu.dimension_semantics<parallel>], iteration_bounds = array<i64: 1>, scalar_prefetch = 0 : i64, scratch_operands = 0 : i64, tpu.core_type = #tpu.core_type<tc>, window_params = [{transform_indices = @transform_0, window_bounds = array<i64: 16, 32>}, {transform_indices = @transform_1, window_bounds = array<i64: 16, 32>}, {transform_indices = @transform_2, window_bounds = array<i64: 16, 32>}, {pipeline_mode = #tpu.pipeline_mode<synchronous>, transform_indices = @transform_3, window_bounds = array<i64: 1, 32>}, {pipeline_mode = #tpu.pipeline_mode<synchronous>, transform_indices = @transform_4, window_bounds = array<i64: 1, 32>}, {transform_indices = @transform_5, window_bounds = array<i64: 16, 32>}, {transform_indices = @transform_6, window_bounds = array<i64: 16, 32>}]} {
    %c0 = arith.constant 0 : index
    %c0_0 = arith.constant 0 : index
    %0 = vector.load %arg1[%c0, %c0_0] : memref<16x32xf32, #tpu.memory_space<vmem>>, vector<16x32xf32>
    %c0_1 = arith.constant 0 : index
    %c0_2 = arith.constant 0 : index
    %1 = vector.load %arg2[%c0_1, %c0_2] : memref<16x32xf32, #tpu.memory_space<vmem>>, vector<16x32xf32>
    %2 = arith.addf %0, %1 : vector<16x32xf32>
    %c0_3 = arith.constant 0 : index
    %c0_4 = arith.constant 0 : index
    %3 = vector.load %arg3[%c0_3, %c0_4] : memref<16x32xf32, #tpu.memory_space<vmem>>, vector<16x32xf32>
    %4 = arith.addf %2, %3 : vector<16x32xf32>
    %c0_5 = arith.constant 0 : index
    %c0_6 = arith.constant 0 : index
    %5 = vector.load %arg4[%c0_5, %c0_6] : memref<1x32xf32, #tpu.memory_space<vmem>>, vector<1x32xf32>
    %c0_7 = arith.constant 0 : index
    %c0_8 = arith.constant 0 : index
    %6 = vector.load %arg5[%c0_7, %c0_8] : memref<1x32xf32, #tpu.memory_space<vmem>>, vector<1x32xf32>
    %cst = arith.constant dense<0.000000e+00> : vector<16xf32>
    %7 = vector.multi_reduction <add>, %4, %cst [1] : vector<16x32xf32> to vector<16xf32>
    %8 = vector.shape_cast %7 : vector<16xf32> to vector<16x1xf32>
    %cst_9 = arith.constant 3.200000e+01 : f32
    %9 = vector.broadcast %cst_9 : f32 to vector<16x1xf32>
    %10 = arith.divf %8, %9 : vector<16x1xf32>
    %11 = vector.broadcast %10 : vector<16x1xf32> to vector<16x32xf32>
    %12 = arith.subf %4, %11 : vector<16x32xf32>
    %13 = vector.broadcast %10 : vector<16x1xf32> to vector<16x32xf32>
    %14 = arith.subf %4, %13 : vector<16x32xf32>
    %15 = arith.mulf %12, %14 : vector<16x32xf32>
    %cst_10 = arith.constant dense<0.000000e+00> : vector<16xf32>
    %16 = vector.multi_reduction <add>, %15, %cst_10 [1] : vector<16x32xf32> to vector<16xf32>
    %17 = vector.shape_cast %16 : vector<16xf32> to vector<16x1xf32>
    %cst_11 = arith.constant 3.200000e+01 : f32
    %18 = vector.broadcast %cst_11 : f32 to vector<16x1xf32>
    %19 = arith.divf %17, %18 : vector<16x1xf32>
    %20 = vector.broadcast %10 : vector<16x1xf32> to vector<16x32xf32>
    %21 = arith.subf %4, %20 : vector<16x32xf32>
    %cst_12 = arith.constant 9.99999996E-13 : f32
    %22 = vector.broadcast %cst_12 : f32 to vector<16x1xf32>
    %23 = arith.addf %19, %22 : vector<16x1xf32>
    %24 = math.rsqrt %23 : vector<16x1xf32>
    %25 = vector.broadcast %24 : vector<16x1xf32> to vector<16x32xf32>
    %26 = arith.mulf %21, %25 : vector<16x32xf32>
    %27 = vector.broadcast %5 : vector<1x32xf32> to vector<16x32xf32>
    %28 = arith.mulf %26, %27 : vector<16x32xf32>
    %29 = vector.broadcast %6 : vector<1x32xf32> to vector<16x32xf32>
    %30 = arith.addf %28, %29 : vector<16x32xf32>
    %c0_13 = arith.constant 0 : index
    %c0_14 = arith.constant 0 : index
    %31 = vector.load %arg6[%c0_13, %c0_14] : memref<16x32xf32, #tpu.memory_space<vmem>>, vector<16x32xf32>
    tpu.vector_store %arg6[%c0_13, %c0_14], %30 {strides = array<i32>} : memref<16x32xf32, #tpu.memory_space<vmem>>, vector<16x32xf32>,
    %32 = arith.truncf %30 : vector<16x32xf32> to vector<16x32xbf16>
    %c0_15 = arith.constant 0 : index
    %c0_16 = arith.constant 0 : index
    %33 = vector.load %arg7[%c0_15, %c0_16] : memref<16x32xbf16, #tpu.memory_space<vmem>>, vector<16x32xbf16>
    tpu.vector_store %arg7[%c0_15, %c0_16], %32 {strides = array<i32>} : memref<16x32xbf16, #tpu.memory_space<vmem>>, vector<16x32xbf16>,
    return
  }
  func.func @transform_0(%arg0: i32) -> (i32, i32) {
    %c0_i32 = arith.constant 0 : i32
    %c0_i32_0 = arith.constant 0 : i32
    return %arg0, %c0_i32 : i32, i32
  }
  func.func @transform_1(%arg0: i32) -> (i32, i32) {
    %c0_i32 = arith.constant 0 : i32
    %c0_i32_0 = arith.constant 0 : i32
    return %arg0, %c0_i32 : i32, i32
  }
  func.func @transform_2(%arg0: i32) -> (i32, i32) {
    %c0_i32 = arith.constant 0 : i32
    %c0_i32_0 = arith.constant 0 : i32
    return %arg0, %c0_i32 : i32, i32
  }
  func.func @transform_3(%arg0: i32) -> (i32, i32) {
    %c0_i32 = arith.constant 0 : i32
    %c0_i32_0 = arith.constant 0 : i32
    %c0_i32_1 = arith.constant 0 : i32
    return %c0_i32, %c0_i32_0 : i32, i32
  }
  func.func @transform_4(%arg0: i32) -> (i32, i32) {
    %c0_i32 = arith.constant 0 : i32
    %c0_i32_0 = arith.constant 0 : i32
    %c0_i32_1 = arith.constant 0 : i32
    return %c0_i32, %c0_i32_0 : i32, i32
  }
  func.func @transform_5(%arg0: i32) -> (i32, i32) {
    %c0_i32 = arith.constant 0 : i32
    %c0_i32_0 = arith.constant 0 : i32
    return %arg0, %c0_i32 : i32, i32
  }
  func.func @transform_6(%arg0: i32) -> (i32, i32) {
    %c0_i32 = arith.constant 0 : i32
    %c0_i32_0 = arith.constant 0 : i32
    return %arg0, %c0_i32 : i32, i32
  }
}

</mosaic_0001>

<bundles_post_ra>
// kernel: tpu_custom_call.1
= control target key start
LH: loop header
LB: loop body
LE: loop exit
PB: predicated region body
PF: predicated region fallthrough
CT: control target
= control target key end

     0   :  { %12 = vsyncpa [#allocation3], 0  ;;  %s380_s0 = inlined_call_operand.hbm [shape: f32[16,32], index: 0, kind: input, shape index: {}]   ;;  %s381_s1 = inlined_call_operand.hbm [shape: f32[16,32], index: 1, kind: input, shape index: {}]   ;;  %s382_s2 = inlined_call_operand.hbm [shape: f32[16,32], index: 2, kind: input, shape index: {}]   ;;  %s383_s3 = inlined_call_operand.vmem [shape: f32[1,32], index: 3, kind: input, shape index: {}]   ;;  %s384_s4 = inlined_call_operand.vmem [shape: f32[1,32], index: 4, kind: input, shape index: {}]   ;;  %s385_s5 = inlined_call_operand.hbm [shape: f32[16,32], index: 5, kind: output, shape index: {0}]   ;;  %s386_s6 = inlined_call_operand.hbm [shape: bf16[16,32], index: 6, kind: output, shape index: {1}]  }
   0x1   :  { %13 = vsyncpa [#allocation6], 0 }
   0x2   :  { %14 = vsyncpa [#allocation4], 0 }
   0x3   :  { %15 = vsyncpa [#allocation10], 0  ;;  %s295_s21 = smov [#allocation5]   ;;  %s296_s23 = smov [#allocation2]  }
   0x4   :  { %s33_s22 = sshll.u32 %s295_s21, 4  ;;  %s21_s24 = sshll.u32 %s296_s23, 4  ;;  %s34_s22 = int_to_ptr.vmem [resolvable:$true] %s33_s22  ;;  %s22_s24 = int_to_ptr.vmem [resolvable:$true] %s21_s24 }
   0x5   :  { %s195_s25 = scalar_lea.vmem %s34_s22, 256  ;;  %p200_p1 = scmp.lt.s32.totalorder %s34_s22, %s34_s22 }
   0x6   :  { %p196_p0 = scmp.ne.s32.totalorder %s34_s22, %s195_s25  ;;  %p201_p2 = scmp.lt.s32.totalorder %s195_s25, %s195_s25 }
   0x8   :  { %p202_p3 = por %p201_p2, %p200_p1 }
   0xa   :  { %p203_p4 = pnand %p202_p3, %p196_p0 }
   0xc   :  { %206 = shalt.err (!%p203_p4)
}
   0xd   :  { %s297_s26 = smov 128   ;;  %s298_s27 = smov 8  }
   0xe   :  { %39 = dma.hbm_to_vmem [thread:$0]  %s381_s1, 256, %s34_s22, [#allocation6], %s297_s26, %s297_s26, %s298_s27  }
   0xf   :  { %s215_s30 = scalar_lea.vmem %s22_s24, 256  ;;  %p220_p6 = scmp.lt.s32.totalorder %s22_s24, %s22_s24 }
  0x10   :  { %p216_p5 = scmp.ne.s32.totalorder %s22_s24, %s215_s30  ;;  %p221_p7 = scmp.lt.s32.totalorder %s215_s30, %s215_s30 }
  0x12   :  { %p222_p8 = por %p221_p7, %p220_p6 }
  0x14   :  { %p223_p9 = pnand %p222_p8, %p216_p5 }
  0x16   :  { %226 = shalt.err (!%p223_p9)
}
  0x17   :  { %27 = dma.hbm_to_vmem [thread:$0]  %s380_s0, 256, %s22_s24, [#allocation3], %s297_s26, %s297_s26, %s298_s27  }
  0x18   :  { %s299_s9 = smov [#allocation7]  }
  0x19   :  { %s45_s10 = sshll.u32 %s299_s9, 4  ;;  %s46_s10 = int_to_ptr.vmem [resolvable:$true] %s45_s10 }
  0x1a   :  { %s235_s11 = scalar_lea.vmem %s46_s10, 256  ;;  %p240_p11 = scmp.lt.s32.totalorder %s46_s10, %s46_s10 }
  0x1b   :  { %p236_p10 = scmp.ne.s32.totalorder %s46_s10, %s235_s11  ;;  %p241_p12 = scmp.lt.s32.totalorder %s235_s11, %s235_s11 }
  0x1d   :  { %p242_p13 = por %p241_p12, %p240_p11 }
  0x1f   :  { %p243_p0 = pnand %p242_p13, %p236_p10 }
  0x21   :  { %246 = shalt.err (!%p243_p0)
}
  0x22   :  { %51 = dma.hbm_to_vmem [thread:$0]  %s382_s2, 256, %s46_s10, [#allocation6], %s297_s26, %s297_s26, %s298_s27  }
  0x23   :  { %287 = dma.done.wait [#allocation3], 256  }
  0x24   :  { %288 = vsyncadd [#allocation3], 4294967040 }
  0x25   :  { %289 = dma.done.wait [#allocation6], 512  }
  0x26   :  { %290 = vsyncadd [#allocation6], 4294966784  ;;  %v65_v0 = vld [vmem:[#allocation2] sm:$0xff]  ;;  %v67_v1 = vld [vmem:[#allocation5] sm:$0xff]  ;;  %vm77_vm0 = vcmask 261120   ;;  %s300_s15 = smov [#allocation8]  }
  0x27   :  { %v71_v2 = vld [vmem:[#allocation7] sm:$0xff]  ;;  %v69_v3 = vadd.f32 %v67_v1, %v65_v0  ;;  %v66_v4 = vld [vmem:[#allocation2 + $0x8] sm:$0xff]  ;;  %v68_v5 = vld [vmem:[#allocation5 + $0x8] sm:$0xff]  ;;  %s139_s16 = sshll.u32 %s300_s15, 4  ;;  %vm131_vm1 = vcmask 257024   ;;  %s301_s17 = smov [#allocation9]   ;;  %s140_s16 = int_to_ptr.vmem [resolvable:$true] %s139_s16 }
  0x28   :  { %v72_v6 = vld [vmem:[#allocation7 + $0x8] sm:$0xff]  ;;  %v70_v7 = vadd.f32 %v68_v5, %v66_v4  ;;  %v168_v29 = vld [vmem:[%s383_s3] ss:$0 sm:$0xff]  ;;  %s151_s18 = sshll.u32 %s301_s17, 4  ;;  %s247_s3 = scalar_lea.vmem %s140_s16, 256  ;;  %s152_s18 = int_to_ptr.vmem [resolvable:$true] %s151_s18 }
  0x29   :  { %v73_v8 = vadd.f32 %v71_v2, %v69_v3  ;;  %v169_v31 = vld [vmem:[%s384_s4] ss:$0 sm:$0xff]  ;;  %p248_p1 = scmp.ne.s32.totalorder %s140_s16, %s247_s3  ;;  %p252_p2 = scmp.lt.s32.totalorder %s140_s16, %s140_s16 }
  0x2a   :  { %v74_v9 = vadd.f32 %v72_v6, %v70_v7  ;;  %p253_p3 = scmp.lt.s32.totalorder %s247_s3, %s247_s3 }
  0x2b   :  { %v78_v10 = vsel %vm77_vm0, %v73_v8, 0.0 }
  0x2c   :  { %79 = vadd.xlane.f32.xlu0 %v78_v10  ;;  %v81_v11 = vsel %vm77_vm0, %v74_v9, 0.0  ;;  %p254_p4 = por %p253_p3, %p252_p2 }
  0x2e   :  { %p255_p5 = pnand %p254_p4, %p248_p1 }
  0x30   :  { %82 = vadd.xlane.f32.xlu0 %v81_v11 }
  0xb5   :  { %v80_v12 = vpop.xlane.xlu0 %79 }
  0xb6   :  { %v85_v13 = vmul.f32 0.03125, %v80_v12 }
  0xb8   :  { %v87_v14 = vsub.f32 %v73_v8, %v85_v13 }
  0xb9   :  { %v83_v15 = vpop.xlane.xlu0 %82 }
  0xba   :  { %v86_v16 = vmul.f32 0.03125, %v83_v15  ;;  %v89_v17 = vmul.f32 %v87_v14, %v87_v14 }
  0xbc   :  { %v88_v18 = vsub.f32 %v74_v9, %v86_v16  ;;  %v91_v19 = vsel %vm77_vm0, %v89_v17, 0.0 }
  0xbd   :  { %92 = vadd.xlane.f32.xlu1 %v91_v19 }
  0xbe   :  { %v90_v20 = vmul.f32 %v88_v18, %v88_v18 }
  0xc0   :  { %v94_v21 = vsel %vm77_vm0, %v90_v20, 0.0 }
  0xc1   :  { %95 = vadd.xlane.f32.xlu1 %v94_v21 }
 0x146   :  { %v93_v22 = vpop.xlane.xlu1 %92 }
 0x147   :  { %v97_v23 = vmul.f32 0.03125, %v93_v22 }
 0x149   :  { %v99_v24 = vadd.f32 1e-12, %v97_v23 }
 0x14a   :  { %v96_v25 = vpop.xlane.xlu1 %95 }
 0x14b   :  { %183 = vrsqrt.f32 %v99_v24  ;;  %v98_v26 = vmul.f32 0.03125, %v96_v25 }
 0x14d   :  { %v100_v27 = vadd.f32 1e-12, %v98_v26 }
 0x14f   :  { %185 = vrsqrt.f32 %v100_v27 }
 0x158   :  { %v184_v28 = vpop.eup %183 }
 0x159   :  { %v103_v30 = vmul.f32 %v184_v28, %v87_v14 }
 0x15b   :  { %v111_v32 = vmul.f32 %v168_v29, %v103_v30 }
 0x15c   :  { %v186_v33 = vpop.eup %185 }
 0x15d   :  { %v104_v34 = vmul.f32 %v186_v33, %v88_v18  ;;  %v119_v35 = vadd.f32 %v169_v31, %v111_v32 }
 0x15f   :  { %v112_v36 = vmul.f32 %v168_v29, %v104_v34  ;;  %121 = vst.msk [vmem:[#allocation8] sm:$0xff] %vm77_vm0, %v119_v35  ;;  %v172_v37 = vpack.c.bf16 %v119_v35, %v119_v35 }
 0x161   :  { %v120_v38 = vadd.f32 %v169_v31, %v112_v36  ;;  %132 = vst.msk [vmem:[#allocation9] sm:$0xf] %vm131_vm1, %v172_v37 }
 0x163   :  { %122 = vst.msk [vmem:[#allocation8 + $0x8] sm:$0xff] %vm77_vm0, %v120_v38  ;;  %v173_v39 = vpack.c.bf16 %v120_v38, %v120_v38 }
 0x164   :  { %258 = shalt.err (!%p255_p5)
}
 0x165   :  { %145 = dma.vmem_to_hbm [thread:$0]  %s140_s16, 256, %s385_s5, [#allocation4], %s297_s26, %s297_s26, %s298_s27   ;;  %133 = vst.msk [vmem:[#allocation9 + $0x4] sm:$0xf] %vm131_vm1, %v173_v39 }
 0x166   :  { %s267_s20 = scalar_lea.vmem %s152_s18, 128  ;;  %p272_p7 = scmp.lt.s32.totalorder %s152_s18, %s152_s18 }
 0x167   :  { %p268_p6 = scmp.ne.s32.totalorder %s152_s18, %s267_s20  ;;  %p273_p8 = scmp.lt.s32.totalorder %s267_s20, %s267_s20 }
 0x169   :  { %p274_p9 = por %p273_p8, %p272_p7 }
 0x16b   :  { %p275_p10 = pnand %p274_p9, %p268_p6 }
 0x16d   :  { %278 = shalt.err (!%p275_p10)
}
 0x16e   :  { %s302_s21 = smov 64   ;;  %s303_s22 = smov 4  }
 0x16f   :  { %157 = dma.vmem_to_hbm [thread:$0]  %s152_s18, 128, %s386_s6, [#allocation10], %s302_s21, %s302_s21, %s303_s22  }
 0x170   :  { %291 = dma.done.wait [#allocation4], 256  }
 0x171   :  { %292 = vsyncadd [#allocation4], 4294967040 }
 0x172   :  { %293 = dma.done.wait [#allocation10], 128  }
 0x173   :  { %294 = vsyncadd [#allocation10], 4294967168 }
 0x174   :  { %164 = vsyncpa [#allocation3], 1 }
 0x175   :  { %165 = vsyncpa [#allocation6], 1 }
 0x176   :  { %166 = vsyncpa [#allocation4], 1 }
 0x177   :  { %167 = vsyncpa [#allocation10], 1 }

</bundles_post_ra>
